<compile_context>
chip_gen: v7x
topology: tpu7x:2x2x1
jax: 0.10.0
libtpu: 0.0.40
codegen_flags: <defaults>
</compile_context>

<pallas_src>
import jax
import jax.numpy as jnp
from jax.experimental import pallas as pl
from jax.experimental.pallas import tpu as pltpu

MAX_N_STEPS_EPISODE = 200
STATE_DIM = 2
GOAL_DIM = 2
IN_DIM = STATE_DIM + GOAL_DIM + 1   # 5
HID = 100
OUT_DIM = 5

IN_PAD = 8       # concat(state, goal, horizon) padded 5 -> 8 lanes
HID_PAD = 128    # hidden width padded 100 -> 128 (lane dense)
OUT_PAD = 8      # output padded 5 -> 8 lanes (narrow writeback; wrapper slices :5)

TB_MAX = 8192       # batch-tile cap (VMEM-safe on v5e/v6e/v7x, see header)
_MIN_SPLIT_TB = 512 # below 2x this, a single full-batch block is cheapest


def _round_up(n, m):
    return ((n + m - 1) // m) * m


def _mlp_kernel(x_ref, w1_ref, b1_ref, w2_ref, b2_ref, w3_ref, b3_ref, o_ref):
    # Layer 1: (tb, 8) @ (8, 128).  x and W1 stay f32 (K is tiny; exact parity).
    h1 = (jnp.dot(x_ref[...], w1_ref[...], preferred_element_type=jnp.float32)
          + b1_ref[...])
    h1 = jnp.maximum(h1, 0.0)

    # Layers 2/3: weights may be bf16 (MXU-native); activations are cast to the
    # weight dtype right before each dot, accumulation is f32, bias/ReLU f32.
    h2 = (jnp.dot(h1.astype(w2_ref.dtype), w2_ref[...],
                  preferred_element_type=jnp.float32)
          + b2_ref[...])
    h2 = jnp.maximum(h2, 0.0)

    o_ref[...] = (jnp.dot(h2.astype(w3_ref.dtype), w3_ref[...],
                          preferred_element_type=jnp.float32)
                  + b3_ref[...]).astype(o_ref.dtype)


def prepare_params(params, max_n_steps_episode=MAX_N_STEPS_EPISODE,
                   weights_dtype=jnp.bfloat16):
    """One-time param prep: pad to lane-friendly widths, fold the horizon
    1/max_n_steps_episode normalization into W1's horizon row, and (optionally)
    cast the two big weight matrices to bf16 for MXU-native matmuls."""
    w1, b1, w2, b2, w3, b3 = params
    hp = HID_PAD - HID
    op = OUT_PAD - OUT_DIM
    ip = IN_PAD - IN_DIM

    w1 = w1.astype(jnp.float32)
    scale = jnp.ones((IN_DIM, 1), jnp.float32).at[STATE_DIM + GOAL_DIM, 0].set(
        1.0 / max_n_steps_episode)
    w1p = jnp.pad(w1 * scale, ((0, ip), (0, hp)))                     # (8, 128) f32
    b1p = jnp.pad(b1.astype(jnp.float32), ((0, 0), (0, hp)))          # (1, 128) f32

    w2p = jnp.pad(w2.astype(jnp.float32),
                  ((0, hp), (0, hp))).astype(weights_dtype)           # (128, 128)
    b2p = jnp.pad(b2.astype(jnp.float32), ((0, 0), (0, hp)))          # (1, 128) f32

    w3p = jnp.pad(w3.astype(jnp.float32),
                  ((0, hp), (0, op))).astype(weights_dtype)           # (128, 8)
    b3p = jnp.pad(b3.astype(jnp.float32), ((0, 0), (0, op)))          # (1, 8) f32

    return (w1p, b1p, w2p, b2p, w3p, b3p)


def _choose_tb(batch, block_b):
    if block_b is not None:
        return block_b
    if batch <= 2 * _MIN_SPLIT_TB:
        # One full-batch block (block dims equal to the full array dims are
        # always legal); not enough work to be worth extra grid steps.
        return batch
    # >= 2 grid steps (so v7x's two TensorCores both get work) with a
    # VMEM-safe cap; multiple of 16 so bf16 intermediates pack full sublanes.
    return min(TB_MAX, _round_up(pl.cdiv(batch, 2), 16))


def nn_agent_forward(state, goal, horizon, prepped_params, block_b=None):
    """Pallas-backed NNAgent.forward.

    state:   (B, 2) f32
    goal:    (B, 2) f32
    horizon: (B, 1) f32 raw step counts (normalization folded into W1)
    prepped_params: output of prepare_params(...)
    Returns logits (B, 5) f32.
    """
    w1, b1, w2, b2, w3, b3 = prepped_params
    B = state.shape[0]

    # Cheap XLA-side concat + zero-pad to 8 lanes (~32 B/row, fuses upstream).
    x = jnp.concatenate([state.astype(jnp.float32),
                         goal.astype(jnp.float32),
                         horizon.astype(jnp.float32)], axis=-1)
    x = jnp.pad(x, ((0, 0), (0, IN_PAD - IN_DIM)))

    tb = _choose_tb(B, block_b)
    grid = (pl.cdiv(B, tb),)

    batch_map = lambda i: (i, 0)
    resident = lambda i: (0, 0)   # same block every step -> stays VMEM-resident

    out_padded = pl.pallas_call(
        _mlp_kernel,
        out_shape=jax.ShapeDtypeStruct((B, OUT_PAD), jnp.float32),
        grid=grid,
        in_specs=[
            pl.BlockSpec((tb, IN_PAD), batch_map),
            pl.BlockSpec((IN_PAD, HID_PAD), resident),
            pl.BlockSpec((1, HID_PAD), resident),
            pl.BlockSpec((HID_PAD, HID_PAD), resident),
            pl.BlockSpec((1, HID_PAD), resident),
            pl.BlockSpec((HID_PAD, OUT_PAD), resident),
            pl.BlockSpec((1, OUT_PAD), resident),
        ],
        out_specs=pl.BlockSpec((tb, OUT_PAD), batch_map),
        compiler_params=pltpu.CompilerParams(
            dimension_semantics=("parallel",),
            vmem_limit_bytes=32 * 1024 * 1024),
    )(x, w1, b1, w2, b2, w3, b3)

    return out_padded[:, :OUT_DIM]


def init_params(key):
    """Deterministic init; mimics PyTorch Linear's U(-1/sqrt(fan_in), ...).
    Weights stored as (in_features, out_features) -- transpose of torch's."""
    ks = jax.random.split(key, 6)

    def lin(kw, kb, fan_in, fan_out):
        bound = 1.0 / jnp.sqrt(jnp.float32(fan_in))
        w = jax.random.uniform(kw, (fan_in, fan_out), jnp.float32, -bound, bound)
        b = jax.random.uniform(kb, (1, fan_out), jnp.float32, -bound, bound)
        return w, b

    w1, b1 = lin(ks[0], ks[1], IN_DIM, HID)
    w2, b2 = lin(ks[2], ks[3], HID, HID)
    w3, b3 = lin(ks[4], ks[5], HID, OUT_DIM)
    return (w1, b1, w2, b2, w3, b3)


def _reference(state, goal, horizon, params):
    w1, b1, w2, b2, w3, b3 = params
    x = jnp.concatenate([state, goal, horizon / MAX_N_STEPS_EPISODE], -1)
    h = jnp.maximum(x @ w1 + b1, 0.0)
    h = jnp.maximum(h @ w2 + b2, 0.0)
    return h @ w3 + b3


if __name__ == "__main__":
    key = jax.random.PRNGKey(0)
    kp, k1, k2, k3, k4, k5, k6, k7, k8, k9 = jax.random.split(key, 10)

    params = init_params(kp)
    prepped_f32 = prepare_params(params, weights_dtype=jnp.float32)   # exact path
    prepped_bf16 = prepare_params(params)                             # fast path

    def make_batch(ks_, kg_, kh_, B):
        s = jax.random.normal(ks_, (B, STATE_DIM), jnp.float32)
        g = jax.random.normal(kg_, (B, GOAL_DIM), jnp.float32)
        h = jax.random.uniform(kh_, (B, 1), jnp.float32, 0.0, MAX_N_STEPS_EPISODE)
        return s, g, h

    # 1) Small batch, f32 weights: exact parity with the reference.
    s, g, h = make_batch(k1, k2, k3, 8)
    out = nn_agent_forward(s, g, h, prepped_f32)
    jax.block_until_ready(out)
    ref = _reference(s, g, h, params)
    assert out.shape == (8, OUT_DIM)
    assert jnp.allclose(out, ref, atol=1e-5, rtol=1e-5)

    # 2) Same batch, bf16 W2/W3 (MXU-native fast path): loose tolerance.
    out_bf = nn_agent_forward(s, g, h, prepped_bf16)
    jax.block_until_ready(out_bf)
    assert jnp.allclose(out_bf, ref, atol=1e-1, rtol=1e-1)

    # 3) Ragged batch with an explicit small tile: exercises the multi-step
    #    grid and the partial edge block, f32 weights for exact parity.
    s2, g2, h2 = make_batch(k4, k5, k6, 300)
    out2 = nn_agent_forward(s2, g2, h2, prepped_f32, block_b=128)
    jax.block_until_ready(out2)
    ref2 = _reference(s2, g2, h2, params)
    assert out2.shape == (300, OUT_DIM)
    assert jnp.allclose(out2, ref2, atol=1e-5, rtol=1e-5)

    # 4) Larger batch on the default tiling heuristic (>= 2 grid steps so the
    #    "parallel" batch axis can shard across v7x's two TensorCores), bf16.
    s3, g3, h3 = make_batch(k7, k8, k9, 2600)
    out3 = nn_agent_forward(s3, g3, h3, prepped_bf16)
    jax.block_until_ready(out3)
    ref3 = _reference(s3, g3, h3, params)
    assert out3.shape == (2600, OUT_DIM)
    assert jnp.allclose(out3, ref3, atol=1e-1, rtol=1e-1)

    # TODO(synk): get_action's softmax + np.random.choice sampling stays host-side
    # (not part of forward).
    print("KERNEL_OK")
</pallas_src>

<mosaic_0001>
module attributes {stable_mosaic.version = 11 : i64} {
  func.func @_mlp_kernel(%arg0: i32, %arg1: memref<8x8xf32, #tpu.memory_space<vmem>>, %arg2: memref<8x128xf32, #tpu.memory_space<vmem>>, %arg3: memref<1x128xf32, #tpu.memory_space<vmem>>, %arg4: memref<128x128xf32, #tpu.memory_space<vmem>>, %arg5: memref<1x128xf32, #tpu.memory_space<vmem>>, %arg6: memref<128x8xf32, #tpu.memory_space<vmem>>, %arg7: memref<1x8xf32, #tpu.memory_space<vmem>>, %arg8: memref<8x8xf32, #tpu.memory_space<vmem>>) attributes {dimension_semantics = [#tpu.dimension_semantics<parallel>], iteration_bounds = array<i64: 1>, scalar_prefetch = 0 : i64, scratch_operands = 0 : i64, tpu.core_type = #tpu.core_type<tc>, window_params = [{transform_indices = @transform_0, window_bounds = array<i64: 8, 8>}, {pipeline_mode = #tpu.pipeline_mode<synchronous>, transform_indices = @transform_1, window_bounds = array<i64: 8, 128>}, {pipeline_mode = #tpu.pipeline_mode<synchronous>, transform_indices = @transform_2, window_bounds = array<i64: 1, 128>}, {pipeline_mode = #tpu.pipeline_mode<synchronous>, transform_indices = @transform_3, window_bounds = array<i64: 128, 128>}, {pipeline_mode = #tpu.pipeline_mode<synchronous>, transform_indices = @transform_4, window_bounds = array<i64: 1, 128>}, {pipeline_mode = #tpu.pipeline_mode<synchronous>, transform_indices = @transform_5, window_bounds = array<i64: 128, 8>}, {pipeline_mode = #tpu.pipeline_mode<synchronous>, transform_indices = @transform_6, window_bounds = array<i64: 1, 8>}, {transform_indices = @transform_7, window_bounds = array<i64: 8, 8>}]} {
    %c0 = arith.constant 0 : index
    %c0_0 = arith.constant 0 : index
    %0 = vector.load %arg1[%c0, %c0_0] : memref<8x8xf32, #tpu.memory_space<vmem>>, vector<8x8xf32>
    %c0_1 = arith.constant 0 : index
    %c0_2 = arith.constant 0 : index
    %1 = vector.load %arg2[%c0_1, %c0_2] : memref<8x128xf32, #tpu.memory_space<vmem>>, vector<8x128xf32>
    %cst = arith.constant dense<0.000000e+00> : vector<8x128xf32>
    %2 = tpu.matmul %0, %1, %cst {dimension_numbers = #tpu.dot_dimension_numbers<[1], [0], [0], [1], [0, 0, 1, 1], [], []>} : vector<8x8xf32>, vector<8x128xf32>, vector<8x128xf32> -> vector<8x128xf32>
    %c0_3 = arith.constant 0 : index
    %c0_4 = arith.constant 0 : index
    %3 = vector.load %arg3[%c0_3, %c0_4] : memref<1x128xf32, #tpu.memory_space<vmem>>, vector<1x128xf32>
    %4 = vector.broadcast %3 : vector<1x128xf32> to vector<8x128xf32>
    %5 = arith.addf %2, %4 : vector<8x128xf32>
    %cst_5 = arith.constant 0.000000e+00 : f32
    %6 = vector.broadcast %cst_5 : f32 to vector<8x128xf32>
    %7 = arith.maximumf %5, %6 : vector<8x128xf32>
    %c0_6 = arith.constant 0 : index
    %c0_7 = arith.constant 0 : index
    %8 = vector.load %arg4[%c0_6, %c0_7] : memref<128x128xf32, #tpu.memory_space<vmem>>, vector<128x128xf32>
    %cst_8 = arith.constant dense<0.000000e+00> : vector<8x128xf32>
    %9 = tpu.matmul %7, %8, %cst_8 {dimension_numbers = #tpu.dot_dimension_numbers<[1], [0], [0], [1], [0, 0, 1, 1], [], []>} : vector<8x128xf32>, vector<128x128xf32>, vector<8x128xf32> -> vector<8x128xf32>
    %c0_9 = arith.constant 0 : index
    %c0_10 = arith.constant 0 : index
    %10 = vector.load %arg5[%c0_9, %c0_10] : memref<1x128xf32, #tpu.memory_space<vmem>>, vector<1x128xf32>
    %11 = vector.broadcast %10 : vector<1x128xf32> to vector<8x128xf32>
    %12 = arith.addf %9, %11 : vector<8x128xf32>
    %cst_11 = arith.constant 0.000000e+00 : f32
    %13 = vector.broadcast %cst_11 : f32 to vector<8x128xf32>
    %14 = arith.maximumf %12, %13 : vector<8x128xf32>
    %c0_12 = arith.constant 0 : index
    %c0_13 = arith.constant 0 : index
    %15 = vector.load %arg6[%c0_12, %c0_13] : memref<128x8xf32, #tpu.memory_space<vmem>>, vector<128x8xf32>
    %cst_14 = arith.constant dense<0.000000e+00> : vector<8x8xf32>
    %16 = tpu.matmul %14, %15, %cst_14 {dimension_numbers = #tpu.dot_dimension_numbers<[1], [0], [0], [1], [0, 0, 1, 1], [], []>} : vector<8x128xf32>, vector<128x8xf32>, vector<8x8xf32> -> vector<8x8xf32>
    %c0_15 = arith.constant 0 : index
    %c0_16 = arith.constant 0 : index
    %17 = vector.load %arg7[%c0_15, %c0_16] : memref<1x8xf32, #tpu.memory_space<vmem>>, vector<1x8xf32>
    %18 = vector.broadcast %17 : vector<1x8xf32> to vector<8x8xf32>
    %19 = arith.addf %16, %18 : vector<8x8xf32>
    %c0_17 = arith.constant 0 : index
    %c0_18 = arith.constant 0 : index
    %20 = vector.load %arg8[%c0_17, %c0_18] : memref<8x8xf32, #tpu.memory_space<vmem>>, vector<8x8xf32>
    tpu.vector_store %arg8[%c0_17, %c0_18], %19 {strides = array<i32>} : memref<8x8xf32, #tpu.memory_space<vmem>>, vector<8x8xf32>,
    return
  }
  func.func @transform_0(%arg0: i32) -> (i32, i32) {
    %c0_i32 = arith.constant 0 : i32
    %c0_i32_0 = arith.constant 0 : i32
    return %arg0, %c0_i32 : i32, i32
  }
  func.func @transform_1(%arg0: i32) -> (i32, i32) {
    %c0_i32 = arith.constant 0 : i32
    %c0_i32_0 = arith.constant 0 : i32
    %c0_i32_1 = arith.constant 0 : i32
    return %c0_i32, %c0_i32_0 : i32, i32
  }
  func.func @transform_2(%arg0: i32) -> (i32, i32) {
    %c0_i32 = arith.constant 0 : i32
    %c0_i32_0 = arith.constant 0 : i32
    %c0_i32_1 = arith.constant 0 : i32
    return %c0_i32, %c0_i32_0 : i32, i32
  }
  func.func @transform_3(%arg0: i32) -> (i32, i32) {
    %c0_i32 = arith.constant 0 : i32
    %c0_i32_0 = arith.constant 0 : i32
    %c0_i32_1 = arith.constant 0 : i32
    return %c0_i32, %c0_i32_0 : i32, i32
  }
  func.func @transform_4(%arg0: i32) -> (i32, i32) {
    %c0_i32 = arith.constant 0 : i32
    %c0_i32_0 = arith.constant 0 : i32
    %c0_i32_1 = arith.constant 0 : i32
    return %c0_i32, %c0_i32_0 : i32, i32
  }
  func.func @transform_5(%arg0: i32) -> (i32, i32) {
    %c0_i32 = arith.constant 0 : i32
    %c0_i32_0 = arith.constant 0 : i32
    %c0_i32_1 = arith.constant 0 : i32
    return %c0_i32, %c0_i32_0 : i32, i32
  }
  func.func @transform_6(%arg0: i32) -> (i32, i32) {
    %c0_i32 = arith.constant 0 : i32
    %c0_i32_0 = arith.constant 0 : i32
    %c0_i32_1 = arith.constant 0 : i32
    return %c0_i32, %c0_i32_0 : i32, i32
  }
  func.func @transform_7(%arg0: i32) -> (i32, i32) {
    %c0_i32 = arith.constant 0 : i32
    %c0_i32_0 = arith.constant 0 : i32
    return %arg0, %c0_i32 : i32, i32
  }
}

</mosaic_0001>

<bundles_post_ra>
// kernel: tpu_custom_call.1
= control target key start
LH: loop header
LB: loop body
LE: loop exit
PB: predicated region body
PF: predicated region fallthrough
CT: control target
= control target key end

     0   :  { %12 = vsyncpa [#allocation3], 0  ;;  %s740_s0 = inlined_call_operand.vmem [shape: f32[8,8], index: 0, kind: input, shape index: {}]   ;;  %s741_s1 = inlined_call_operand.hbm [shape: f32[8,128], index: 1, kind: input, shape index: {}]   ;;  %s742_s2 = inlined_call_operand.vmem [shape: f32[1,128], index: 2, kind: input, shape index: {}]   ;;  %s743_s3 = inlined_call_operand.vmem [shape: f32[128,128], index: 3, kind: input, shape index: {}]   ;;  %s744_s4 = inlined_call_operand.vmem [shape: f32[1,128], index: 4, kind: input, shape index: {}]   ;;  %s745_s5 = inlined_call_operand.vmem [shape: f32[128,8], index: 5, kind: input, shape index: {}]   ;;  %s746_s6 = inlined_call_operand.vmem [shape: f32[1,8], index: 6, kind: input, shape index: {}]   ;;  %s747_s7 = inlined_call_operand.hbm [shape: f32[8,8], index: 7, kind: output, shape index: {}]  }
   0x1   :  { %13 = vsyncpa [#allocation4], 0  ;;  %s542_s24 = smov [#allocation2]   ;;  %s494_s28 = scalar_lea.hbm %s741_s1, 128 }
   0x2   :  { %s22_s25 = sshll.u32 %s542_s24, 4  ;;  %p495_p0 = scmp.ne.s32.totalorder %s741_s1, %s494_s28  ;;  %s23_s25 = int_to_ptr.vmem [resolvable:$true] %s22_s25 }
   0x3   :  { %p498_p1 = scmp.lt.u32.totalorder %s494_s28, %s741_s1 }
   0x5   :  { %p500_p2 = pnand %p498_p1, %p495_p0 }
   0x7   :  { %503 = shalt.err (!%p500_p2)
}
   0x8   :  { %s504_s10 = scalar_lea.vmem %s23_s25, 128  ;;  %p509_p4 = scmp.lt.s32.totalorder %s23_s25, %s23_s25 }
   0x9   :  { %p505_p3 = scmp.ne.s32.totalorder %s23_s25, %s504_s10  ;;  %p510_p5 = scmp.lt.s32.totalorder %s504_s10, %s504_s10 }
   0xb   :  { %p511_p6 = por %p510_p5, %p509_p4 }
   0xd   :  { %p512_p7 = pnand %p511_p6, %p505_p3 }
   0xf   :  { %515 = shalt.err (!%p512_p7)
}
  0x10   :  { %25 = dma.hbm_to_vmem [thread:$0]  %s741_s1, 128, %s23_s25, [#allocation3]  }
  0x11   :  { %538 = dma.done.wait [#allocation3], 128  }
  0x12   :  { %539 = vsyncadd [#allocation3], 4294967168  ;;  %v543_v0 = vmov 0.0   ;;  %vm544_vm0 = vmmov 0   ;;  %v545_v1 = vmov 0.0|0.0   ;;  %vm48_vm1 = vcmask 64512  }
  0x13   :  { %366 = vmatprep.subr.mxu0 %v543_v0  ;;  %368 = vmatprep.mubr.msk.f32.mxu0 %vm544_vm0, %v543_v0  ;;  %v40_v2 = vld [vmem:[#allocation2] sm:$0xff]  ;;  %v124_v5 = vld [vmem:[%s743_s3 + $0x8] sm:$0xff]  ;;  %v125_v6 = vld [vmem:[%s743_s3 + $0x10] sm:$0xff]  ;;  %s546_s30 = smov [#allocation5]  }
  0x14   :  { %441 = vmatprep.subr.bf16.mxu1 %v545_v1  ;;  %403 = vmatprep.mubr.msk.f32.mxu1 %vm544_vm0, %v543_v0  ;;  %v39_v3 = vld [vmem:[%s740_s0] sm:$0xff]  ;;  %v126_v7 = vld [vmem:[%s743_s3 + $0x18] sm:$0xff]  ;;  %v128_v11 = vld [vmem:[%s743_s3 + $0x28] sm:$0xff]  ;;  %s317_s8 = sshll.u32 %s546_s30, 4  ;;  %s318_s8 = int_to_ptr.vmem [resolvable:$true] %s317_s8 }
  0x15   :  { %v123_v4 = vld [vmem:[%s743_s3] sm:$0xff]  ;;  %367 = vmatpush3.msra.mxu0 %v40_v2  ;;  %v445_v9 = vpack.c.bf16 %v126_v7, %v125_v6  ;;  %v129_v13 = vld [vmem:[%s743_s3 + $0x30] sm:$0xff]  ;;  %v130_v14 = vld [vmem:[%s743_s3 + $0x38] sm:$0xff]  ;;  %p521_p9 = scmp.lt.s32.totalorder %s318_s8, %s318_s8 }
  0x16   :  { %369 = vmatmul.mubr.msk.f32.vlgmr.msra.gmra.mrb[0].mxu0 %vm48_vm1, %v39_v3  ;;  %v442_v8 = vpack.c.bf16 %v124_v5, %v123_v4  ;;  %465 = vmatprep.subr.bf16.mxu0 %v545_v1  ;;  %v127_v10 = vld [vmem:[%s743_s3 + $0x20] sm:$0xff]  ;;  %v451_v15 = vpack.c.bf16 %v130_v14, %v129_v13  ;;  %v132_v17 = vld [vmem:[%s743_s3 + $0x48] sm:$0xff]  ;;  %v133_v19 = vld [vmem:[%s743_s3 + $0x50] sm:$0xff] }
  0x17   :  { %438 = vmatprep.mubr.msk.f32.mxu0 %vm544_vm0, %v543_v0  ;;  %v448_v12 = vpack.c.bf16 %v128_v11, %v127_v10  ;;  %v131_v16 = vld [vmem:[%s743_s3 + $0x40] sm:$0xff]  ;;  %v134_v20 = vld [vmem:[%s743_s3 + $0x58] sm:$0xff]  ;;  %v136_v23 = vld [vmem:[%s743_s3 + $0x68] sm:$0xff] }
  0x18   :  { %443 = vmatpush3.bf16.msra.mxu1 %v442_v8  ;;  %v454_v18 = vpack.c.bf16 %v132_v17, %v131_v16  ;;  %v457_v21 = vpack.c.bf16 %v134_v20, %v133_v19  ;;  %v135_v22 = vld [vmem:[%s743_s3 + $0x60] sm:$0xff]  ;;  %v137_v25 = vld [vmem:[%s743_s3 + $0x70] sm:$0xff]  ;;  %v138_v26 = vld [vmem:[%s743_s3 + $0x78] sm:$0xff] }
  0x19   :  { %444 = vmatprep.subr.bf16.mxu1 %v545_v1  ;;  %v460_v24 = vpack.c.bf16 %v136_v23, %v135_v22  ;;  %v463_v27 = vpack.c.bf16 %v138_v26, %v137_v25  ;;  %v217_v28 = vld [vmem:[%s745_s5] sm:$0xff]  ;;  %v218_v29 = vld [vmem:[%s745_s5 + $0x8] sm:$0xff]  ;;  %v219_v30 = vld [vmem:[%s745_s5 + $0x10] sm:$0xff] }
  0x1a   :  { %v466_v31 = vpack.c.bf16 %v218_v29, %v217_v28  ;;  %v220_v32 = vld [vmem:[%s745_s5 + $0x18] sm:$0xff]  ;;  %v221_v34 = vld [vmem:[%s745_s5 + $0x20] sm:$0xff]  ;;  %v222_v35 = vld [vmem:[%s745_s5 + $0x28] sm:$0xff] }
  0x1b   :  { %v469_v33 = vpack.c.bf16 %v220_v32, %v219_v30  ;;  %v472_v36 = vpack.c.bf16 %v222_v35, %v221_v34  ;;  %v223_v37 = vld [vmem:[%s745_s5 + $0x30] sm:$0xff]  ;;  %v224_v38 = vld [vmem:[%s745_s5 + $0x38] sm:$0xff]  ;;  %v225_v40 = vld [vmem:[%s745_s5 + $0x40] sm:$0xff] }
  0x1c   :  { %446 = vmatpush3.bf16.msra.mxu1 %v445_v9  ;;  %467 = vmatpush3.bf16.msra.mxu0 %v466_v31  ;;  %v475_v39 = vpack.c.bf16 %v224_v38, %v223_v37  ;;  %v226_v41 = vld [vmem:[%s745_s5 + $0x48] sm:$0xff]  ;;  %v227_v43 = vld [vmem:[%s745_s5 + $0x50] sm:$0xff]  ;;  %v228_v44 = vld [vmem:[%s745_s5 + $0x58] sm:$0xff] }
  0x1d   :  { %447 = vmatprep.subr.bf16.mxu1 %v545_v1  ;;  %468 = vmatprep.subr.bf16.mxu0 %v545_v1  ;;  %v478_v42 = vpack.c.bf16 %v226_v41, %v225_v40  ;;  %v481_v45 = vpack.c.bf16 %v228_v44, %v227_v43  ;;  %v229_v46 = vld [vmem:[%s745_s5 + $0x60] sm:$0xff]  ;;  %v230_v47 = vld [vmem:[%s745_s5 + $0x68] sm:$0xff]  ;;  %v231_v54 = vld [vmem:[%s745_s5 + $0x70] sm:$0xff] }
  0x1e   :  { %v484_v48 = vpack.c.bf16 %v230_v47, %v229_v46  ;;  %v326_v49 = vld [vmem:[%s742_s2] ss:$0 sm:$0xff]  ;;  %v232_v55 = vld [vmem:[%s745_s5 + $0x78] sm:$0xff]  ;;  %s516_s5 = scalar_lea.vmem %s318_s8, 128 }
  0x1f   :  { %v487_v56 = vpack.c.bf16 %v232_v55, %v231_v54  ;;  %v328_v57 = vld [vmem:[%s744_s4] ss:$0 sm:$0xff]  ;;  %p517_p8 = scmp.ne.s32.totalorder %s318_s8, %s516_s5  ;;  %p522_p10 = scmp.lt.s32.totalorder %s516_s5, %s516_s5 }
  0x20   :  { %449 = vmatpush3.bf16.msra.mxu1 %v448_v12  ;;  %470 = vmatpush3.bf16.msra.mxu0 %v469_v33  ;;  %v329_v62 = vld [vmem:[%s746_s6] ss:$0 sm:$0xff] }
  0x21   :  { %450 = vmatprep.subr.bf16.mxu1 %v545_v1  ;;  %471 = vmatprep.subr.bf16.mxu0 %v545_v1  ;;  %p523_p11 = por %p522_p10, %p521_p9 }
  0x23   :  { %p524_p12 = pnand %p523_p11, %p517_p8 }
  0x24   :  { %452 = vmatpush3.bf16.msra.mxu1 %v451_v15  ;;  %473 = vmatpush3.bf16.msra.mxu0 %v472_v36 }
  0x25   :  { %453 = vmatprep.subr.bf16.mxu1 %v545_v1  ;;  %474 = vmatprep.subr.bf16.mxu0 %v545_v1 }
  0x28   :  { %455 = vmatpush3.bf16.msra.mxu1 %v454_v18  ;;  %476 = vmatpush3.bf16.msra.mxu0 %v475_v39 }
  0x29   :  { %456 = vmatprep.subr.bf16.mxu1 %v545_v1  ;;  %477 = vmatprep.subr.bf16.mxu0 %v545_v1 }
  0x2c   :  { %458 = vmatpush3.bf16.msra.mxu1 %v457_v21  ;;  %479 = vmatpush3.bf16.msra.mxu0 %v478_v42 }
  0x2d   :  { %459 = vmatprep.subr.bf16.mxu1 %v545_v1  ;;  %480 = vmatprep.subr.bf16.mxu0 %v545_v1 }
  0x30   :  { %461 = vmatpush3.bf16.msra.mxu1 %v460_v24  ;;  %482 = vmatpush3.bf16.msra.mxu0 %v481_v45 }
  0x31   :  { %462 = vmatprep.subr.bf16.mxu1 %v545_v1  ;;  %483 = vmatprep.subr.bf16.mxu0 %v545_v1 }
  0x34   :  { %464 = vmatpush3.bf16.msra.mxu1 %v463_v27  ;;  %485 = vmatpush3.bf16.msra.mxu0 %v484_v48 }
  0x35   :  { %486 = vmatprep.subr.bf16.mxu0 %v545_v1 }
  0x38   :  { %488 = vmatpush3.bf16.msra.mxu0 %v487_v56 }
  0xe9   :  { %v118_v50 = vpop.f32.mrb[0].mxu0 }
  0xea   :  { %v119_v51 = vadd.f32 %v326_v49, %v118_v50  ;;  %v370_v52 = vpop.f32.mrb[1].mxu0 }
  0xec   :  { %v122_v53 = vmax.f32 %v119_v51, 0.0 }
  0xee   :  { %404 = vmatmul.mubr.f32.vlgmr.msra.gmra.mrb[0].mxu1 %v122_v53 }
 0x1c1   :  { %v212_v58 = vpop.f32.mrb[0].mxu1 }
 0x1c2   :  { %v213_v59 = vadd.f32 %v328_v57, %v212_v58  ;;  %v405_v60 = vpop.f32.mrb[1].mxu1 }
 0x1c4   :  { %v216_v61 = vmax.f32 %v213_v59, 0.0 }
 0x1c6   :  { %439 = vmatmul.mubr.f32.vlgmr.msra.gmra.mrb[2].mxu0 %v216_v61 }
 0x299   :  { %v306_v63 = vpop.f32.mrb[2].mxu0 }
 0x29a   :  { %v307_v0 = vadd.f32 %v329_v62, %v306_v63  ;;  %v440_v1 = vpop.f32.mrb[3].mxu0 }
 0x29c   :  { %310 = vst.msk [vmem:[#allocation5] sm:$0xff] %vm48_vm1, %v307_v0 }
 0x29d   :  { %527 = shalt.err (!%p524_p12)
}
 0x29e   :  { %s528_s10 = scalar_lea.hbm %s747_s7, 128 }
 0x29f   :  { %p529_p13 = scmp.ne.s32.totalorder %s747_s7, %s528_s10  ;;  %p532_p0 = scmp.lt.u32.totalorder %s528_s10, %s747_s7 }
 0x2a1   :  { %p534_p1 = pnand %p532_p0, %p529_p13 }
 0x2a3   :  { %537 = shalt.err (!%p534_p1)
}
 0x2a4   :  { %320 = dma.vmem_to_hbm [thread:$0]  %s318_s8, 128, %s747_s7, [#allocation4]  }
 0x2a5   :  { %540 = dma.done.wait [#allocation4], 128  }
 0x2a6   :  { %541 = vsyncadd [#allocation4], 4294967168 }
 0x2a7   :  { %324 = vsyncpa [#allocation3], 1 }
 0x2a8   :  { %325 = vsyncpa [#allocation4], 1 }

</bundles_post_ra>
